<compile_context>
chip_gen: v5e
topology: v5e:2x2
jax: 0.10.0
libtpu: 0.0.40
codegen_flags: <defaults>
</compile_context>

<pallas_src>
import jax
import jax.numpy as jnp
from jax import lax
from jax.experimental import pallas as pl
from jax.experimental.pallas import tpu as pltpu


def _lstm_head_kernel(gx_ref, h0_ref, c0_ref, whh_ref, whead_ref, bhead_ref,
                      upd_ref, hn_ref, cn_ref):
    """Serial LSTM recurrence (input projection precomputed) + head projection."""
    S = gx_ref.shape[0]
    B, H = h0_ref.shape

    whh = whh_ref[...]                           # (H, 4H) bf16, resident across steps

    # Lane mask selecting the g-gate quarter [2H, 3H) -- hoisted out of the loop.
    lane = lax.broadcasted_iota(jnp.int32, (B, 4 * H), 1)
    g_mask = (lane >= 2 * H) & (lane < 3 * H)

    h = h0_ref[...]                              # (B, H) f32
    c = c0_ref[...]                              # (B, H) f32

    # Fully unrolled serial time loop (S static): only h @ W_hh on the critical path.
    for t in range(S):
        gates = (jnp.dot(h.astype(jnp.bfloat16), whh,
                         preferred_element_type=jnp.float32)
                 + gx_ref[t])                    # (B, 4H); x-proj + bias precomputed
        sig = jax.nn.sigmoid(gates)              # one full-width EUP pass
        tnh = jnp.tanh(gates)                    # one full-width EUP pass
        act = jnp.where(g_mask, tnh, sig)        # i, f, o -> sigmoid ; g -> tanh
        i_g = act[:, 0 * H:1 * H]
        f_g = act[:, 1 * H:2 * H]
        g_g = act[:, 2 * H:3 * H]
        o_g = act[:, 3 * H:4 * H]
        c = f_g * c + i_g * g_g
        h = o_g * jnp.tanh(c)

    hn_ref[...] = h
    cn_ref[...] = c
    # head: Linear(hidden, 2) on the last timestep's hidden state (f32, off the hot loop)
    upd_ref[...] = (jnp.dot(h, whead_ref[...], preferred_element_type=jnp.float32)
                    + bhead_ref[...])


def _full_spec(shape):
    # single grid point -> block == full array
    return pl.BlockSpec(shape, lambda i: (0,) * len(shape))


@jax.jit
def tiny_rnn_forward(params, x, state):
    """x: (B, S, 2) float32.  state: (B, H) array  OR  tuple (h0, c0) each (1, B, H)."""
    B, S, I = x.shape
    H = params["w_hh_t"].shape[0]

    if isinstance(state, tuple):
        h0_full, c0_full = state                 # (num_layers=1, B, H) each
    else:
        h0_full = state[None]                    # h0[0] = state
        c0_full = jnp.zeros_like(h0_full)
    h0 = h0_full[0].astype(jnp.float32)          # (B, H)
    c0 = c0_full[0].astype(jnp.float32)

    # Hoisted input projection + combined bias: one matmul producing a lane-dense
    # (S, B, 4H) f32 tensor (no separate transpose op; bf16 MXU operands, f32 accum).
    gates_x = (jnp.einsum("bsi,ig->sbg",
                          x.astype(jnp.bfloat16),
                          params["w_ih_t"].astype(jnp.bfloat16),
                          preferred_element_type=jnp.float32)
               + params["bias"])                 # (S, B, 4H) f32

    whh_bf16 = params["w_hh_t"].astype(jnp.bfloat16)   # (H, 4H)

    out_shapes = (
        jax.ShapeDtypeStruct((B, 2), jnp.float32),     # upd (pre-unsqueeze)
        jax.ShapeDtypeStruct((B, H), jnp.float32),     # hn
        jax.ShapeDtypeStruct((B, H), jnp.float32),     # cn
    )

    upd, hn, cn = pl.pallas_call(
        _lstm_head_kernel,
        out_shape=out_shapes,
        grid=(1,),
        in_specs=[
            _full_spec((S, B, 4 * H)),       # gates_x
            _full_spec((B, H)),              # h0
            _full_spec((B, H)),              # c0
            _full_spec((H, 4 * H)),          # W_hh^T (bf16)
            _full_spec((H, 2)),              # head W^T
            _full_spec((1, 2)),              # head bias
        ],
        out_specs=[
            _full_spec((B, 2)),
            _full_spec((B, H)),
            _full_spec((B, H)),
        ],
        compiler_params=pltpu.CompilerParams(dimension_semantics=("arbitrary",)),
    )(gates_x, h0, c0, whh_bf16, params["head_w_t"], params["head_b"])

    return upd[:, None, :], (hn[None], cn[None])


def init_params(key, hidden):
    """Deterministic init mimicking PyTorch defaults: U(-1/sqrt(H), 1/sqrt(H))."""
    I = 2
    k = 1.0 / jnp.sqrt(jnp.float32(hidden))
    ks = jax.random.split(key, 7)
    u = lambda kk, shape, bound: jax.random.uniform(
        kk, shape, jnp.float32, -bound, bound)
    w_ih = u(ks[0], (4 * hidden, I), k)          # PyTorch layout (4H, I)
    w_hh = u(ks[1], (4 * hidden, hidden), k)     # (4H, H)
    b_ih = u(ks[2], (4 * hidden,), k)
    b_hh = u(ks[3], (4 * hidden,), k)
    k_head = 1.0 / jnp.sqrt(jnp.float32(hidden))
    head_w = u(ks[4], (2, hidden), k_head)       # (2, H)
    head_b = u(ks[5], (2,), k_head)
    return {
        "w_ih_t": jnp.transpose(w_ih),                   # (I, 4H)
        "w_hh_t": jnp.transpose(w_hh),                   # (H, 4H)
        "bias": (b_ih + b_hh)[None, :],                  # (1, 4H)
        "head_w_t": jnp.transpose(head_w),               # (H, 2)
        "head_b": head_b[None, :],                       # (1, 2)
    }


def _reference_forward(params, x, state):
    """Pure-JAX exact-f32 reference (lax.scan LSTM) for correctness checks."""
    B, S, I = x.shape
    H = params["w_hh_t"].shape[0]
    if isinstance(state, tuple):
        h0, c0 = state[0][0], state[1][0]
    else:
        h0, c0 = state, jnp.zeros_like(state)

    def step(carry, x_t):
        h, c = carry
        gates = x_t @ params["w_ih_t"] + h @ params["w_hh_t"] + params["bias"]
        i_g = jax.nn.sigmoid(gates[:, 0 * H:1 * H])
        f_g = jax.nn.sigmoid(gates[:, 1 * H:2 * H])
        g_g = jnp.tanh(gates[:, 2 * H:3 * H])
        o_g = jax.nn.sigmoid(gates[:, 3 * H:4 * H])
        c = f_g * c + i_g * g_g
        h = o_g * jnp.tanh(c)
        return (h, c), None

    (h, c), _ = lax.scan(step, (h0, c0), jnp.transpose(x, (1, 0, 2)))
    upd = h @ params["head_w_t"] + params["head_b"]
    return upd[:, None, :], (h[None], c[None])


if __name__ == "__main__":
    key = jax.random.PRNGKey(0)
    k_param, k_x, k_h, k_c = jax.random.split(key, 4)

    batch, seq, hidden = 2, 8, 32
    params = init_params(k_param, hidden)

    x = jax.random.normal(k_x, (batch, seq, 2), jnp.float32)

    # Path 1: non-tuple state (PyTorch branch: h0[0] = state, c0 = 0).
    state = jax.random.normal(k_h, (batch, hidden), jnp.float32)
    upd, (hn, cn) = tiny_rnn_forward(params, x, state)
    jax.block_until_ready((upd, hn, cn))

    assert upd.shape == (batch, 1, 2)
    assert hn.shape == (1, batch, hidden) and cn.shape == (1, batch, hidden)

    upd_r, (hn_r, cn_r) = _reference_forward(params, x, state)
    # Tolerance covers the bf16 MXU-operand cast (accumulation stays f32).
    assert jnp.allclose(upd, upd_r, atol=2e-2, rtol=2e-2)
    assert jnp.allclose(hn, hn_r, atol=2e-2, rtol=2e-2)
    assert jnp.allclose(cn, cn_r, atol=2e-2, rtol=2e-2)

    # Path 2: tuple state (h0, c0) each (num_layers=1, B, H).
    h0 = jax.random.normal(k_h, (1, batch, hidden), jnp.float32)
    c0 = jax.random.normal(k_c, (1, batch, hidden), jnp.float32)
    upd2, (hn2, cn2) = tiny_rnn_forward(params, x, (h0, c0))
    jax.block_until_ready((upd2, hn2, cn2))
    upd2_r, (hn2_r, cn2_r) = _reference_forward(params, x, (h0, c0))
    assert jnp.allclose(upd2, upd2_r, atol=2e-2, rtol=2e-2)
    assert jnp.allclose(hn2, hn2_r, atol=2e-2, rtol=2e-2)
    assert jnp.allclose(cn2, cn2_r, atol=2e-2, rtol=2e-2)

    print("KERNEL_OK")
</pallas_src>

<mosaic_0001>
module attributes {stable_mosaic.version = 11 : i64} {
  func.func @_lstm_head_kernel(%arg0: i32, %arg1: memref<8x2x128xf32, #tpu.memory_space<vmem>>, %arg2: memref<2x32xf32, #tpu.memory_space<vmem>>, %arg3: memref<2x32xf32, #tpu.memory_space<vmem>>, %arg4: memref<32x128xbf16, #tpu.memory_space<vmem>>, %arg5: memref<32x2xf32, #tpu.memory_space<vmem>>, %arg6: memref<1x2xf32, #tpu.memory_space<vmem>>, %arg7: memref<2x2xf32, #tpu.memory_space<vmem>>, %arg8: memref<2x32xf32, #tpu.memory_space<vmem>>, %arg9: memref<2x32xf32, #tpu.memory_space<vmem>>) attributes {dimension_semantics = [#tpu.dimension_semantics<arbitrary>], iteration_bounds = array<i64: 1>, scalar_prefetch = 0 : i64, scratch_operands = 0 : i64, tpu.core_type = #tpu.core_type<tc>, window_params = [{pipeline_mode = #tpu.pipeline_mode<synchronous>, transform_indices = @transform_0, window_bounds = array<i64: 8, 2, 128>}, {pipeline_mode = #tpu.pipeline_mode<synchronous>, transform_indices = @transform_1, window_bounds = array<i64: 2, 32>}, {pipeline_mode = #tpu.pipeline_mode<synchronous>, transform_indices = @transform_2, window_bounds = array<i64: 2, 32>}, {pipeline_mode = #tpu.pipeline_mode<synchronous>, transform_indices = @transform_3, window_bounds = array<i64: 32, 128>}, {pipeline_mode = #tpu.pipeline_mode<synchronous>, transform_indices = @transform_4, window_bounds = array<i64: 32, 2>}, {pipeline_mode = #tpu.pipeline_mode<synchronous>, transform_indices = @transform_5, window_bounds = array<i64: 1, 2>}, {pipeline_mode = #tpu.pipeline_mode<synchronous>, transform_indices = @transform_6, window_bounds = array<i64: 2, 2>}, {pipeline_mode = #tpu.pipeline_mode<synchronous>, transform_indices = @transform_7, window_bounds = array<i64: 2, 32>}, {pipeline_mode = #tpu.pipeline_mode<synchronous>, transform_indices = @transform_8, window_bounds = array<i64: 2, 32>}]} {
    %c0 = arith.constant 0 : index
    %c0_0 = arith.constant 0 : index
    %0 = vector.load %arg4[%c0, %c0_0] : memref<32x128xbf16, #tpu.memory_space<vmem>>, vector<32x128xbf16>
    %1 = tpu.iota {dimensions = array<i32: 1>} : vector<2x128xi32>
    %c64_i32 = arith.constant 64 : i32
    %2 = vector.broadcast %c64_i32 : i32 to vector<2x128xi32>
    %3 = arith.cmpi sge, %1, %2 : vector<2x128xi32>
    %c96_i32 = arith.constant 96 : i32
    %4 = vector.broadcast %c96_i32 : i32 to vector<2x128xi32>
    %5 = arith.cmpi slt, %1, %4 : vector<2x128xi32>
    %6 = arith.andi %3, %5 : vector<2x128xi1>
    %c0_1 = arith.constant 0 : index
    %c0_2 = arith.constant 0 : index
    %7 = vector.load %arg2[%c0_1, %c0_2] : memref<2x32xf32, #tpu.memory_space<vmem>>, vector<2x32xf32>
    %c0_3 = arith.constant 0 : index
    %c0_4 = arith.constant 0 : index
    %8 = vector.load %arg3[%c0_3, %c0_4] : memref<2x32xf32, #tpu.memory_space<vmem>>, vector<2x32xf32>
    %9 = arith.truncf %7 : vector<2x32xf32> to vector<2x32xbf16>
    %cst = arith.constant dense<0.000000e+00> : vector<2x128xf32>
    %10 = tpu.matmul %9, %0, %cst {dimension_numbers = #tpu.dot_dimension_numbers<[1], [0], [0], [1], [0, 0, 1, 1], [], []>} : vector<2x32xbf16>, vector<32x128xbf16>, vector<2x128xf32> -> vector<2x128xf32>
    %c0_5 = arith.constant 0 : index
    %c0_6 = arith.constant 0 : index
    %c0_7 = arith.constant 0 : index
    %11 = vector.load %arg1[%c0_5, %c0_6, %c0_7] : memref<8x2x128xf32, #tpu.memory_space<vmem>>, vector<1x2x128xf32>
    %12 = vector.shape_cast %11 : vector<1x2x128xf32> to vector<2x128xf32>
    %13 = arith.addf %10, %12 : vector<2x128xf32>
    %14 = arith.negf %13 : vector<2x128xf32>
    %15 = math.exp %14 : vector<2x128xf32>
    %cst_8 = arith.constant 1.000000e+00 : f32
    %16 = vector.broadcast %cst_8 : f32 to vector<2x128xf32>
    %17 = arith.addf %16, %15 : vector<2x128xf32>
    %18 = arith.divf %16, %17 : vector<2x128xf32>
    %19 = math.tanh %13 : vector<2x128xf32>
    %20 = arith.select %6, %19, %18 : vector<2x128xi1>, vector<2x128xf32>
    %21 = vector.extract_strided_slice %20 {offsets = [0, 0], sizes = [2, 32], strides = [1, 1]} : vector<2x128xf32> to vector<2x32xf32>
    %22 = vector.extract_strided_slice %20 {offsets = [0, 32], sizes = [2, 32], strides = [1, 1]} : vector<2x128xf32> to vector<2x32xf32>
    %23 = vector.extract_strided_slice %20 {offsets = [0, 64], sizes = [2, 32], strides = [1, 1]} : vector<2x128xf32> to vector<2x32xf32>
    %24 = vector.extract_strided_slice %20 {offsets = [0, 96], sizes = [2, 32], strides = [1, 1]} : vector<2x128xf32> to vector<2x32xf32>
    %25 = arith.mulf %22, %8 : vector<2x32xf32>
    %26 = arith.mulf %21, %23 : vector<2x32xf32>
    %27 = arith.addf %25, %26 : vector<2x32xf32>
    %28 = math.tanh %27 : vector<2x32xf32>
    %29 = arith.mulf %24, %28 : vector<2x32xf32>
    %30 = arith.truncf %29 : vector<2x32xf32> to vector<2x32xbf16>
    %cst_9 = arith.constant dense<0.000000e+00> : vector<2x128xf32>
    %31 = tpu.matmul %30, %0, %cst_9 {dimension_numbers = #tpu.dot_dimension_numbers<[1], [0], [0], [1], [0, 0, 1, 1], [], []>} : vector<2x32xbf16>, vector<32x128xbf16>, vector<2x128xf32> -> vector<2x128xf32>
    %c1 = arith.constant 1 : index
    %c0_10 = arith.constant 0 : index
    %c0_11 = arith.constant 0 : index
    %32 = vector.load %arg1[%c1, %c0_10, %c0_11] : memref<8x2x128xf32, #tpu.memory_space<vmem>>, vector<1x2x128xf32>
    %33 = vector.shape_cast %32 : vector<1x2x128xf32> to vector<2x128xf32>
    %34 = arith.addf %31, %33 : vector<2x128xf32>
    %35 = arith.negf %34 : vector<2x128xf32>
    %36 = math.exp %35 : vector<2x128xf32>
    %cst_12 = arith.constant 1.000000e+00 : f32
    %37 = vector.broadcast %cst_12 : f32 to vector<2x128xf32>
    %38 = arith.addf %37, %36 : vector<2x128xf32>
    %39 = arith.divf %37, %38 : vector<2x128xf32>
    %40 = math.tanh %34 : vector<2x128xf32>
    %41 = arith.select %6, %40, %39 : vector<2x128xi1>, vector<2x128xf32>
    %42 = vector.extract_strided_slice %41 {offsets = [0, 0], sizes = [2, 32], strides = [1, 1]} : vector<2x128xf32> to vector<2x32xf32>
    %43 = vector.extract_strided_slice %41 {offsets = [0, 32], sizes = [2, 32], strides = [1, 1]} : vector<2x128xf32> to vector<2x32xf32>
    %44 = vector.extract_strided_slice %41 {offsets = [0, 64], sizes = [2, 32], strides = [1, 1]} : vector<2x128xf32> to vector<2x32xf32>
    %45 = vector.extract_strided_slice %41 {offsets = [0, 96], sizes = [2, 32], strides = [1, 1]} : vector<2x128xf32> to vector<2x32xf32>
    %46 = arith.mulf %43, %27 : vector<2x32xf32>
    %47 = arith.mulf %42, %44 : vector<2x32xf32>
    %48 = arith.addf %46, %47 : vector<2x32xf32>
    %49 = math.tanh %48 : vector<2x32xf32>
    %50 = arith.mulf %45, %49 : vector<2x32xf32>
    %51 = arith.truncf %50 : vector<2x32xf32> to vector<2x32xbf16>
    %cst_13 = arith.constant dense<0.000000e+00> : vector<2x128xf32>
    %52 = tpu.matmul %51, %0, %cst_13 {dimension_numbers = #tpu.dot_dimension_numbers<[1], [0], [0], [1], [0, 0, 1, 1], [], []>} : vector<2x32xbf16>, vector<32x128xbf16>, vector<2x128xf32> -> vector<2x128xf32>
    %c2 = arith.constant 2 : index
    %c0_14 = arith.constant 0 : index
    %c0_15 = arith.constant 0 : index
    %53 = vector.load %arg1[%c2, %c0_14, %c0_15] : memref<8x2x128xf32, #tpu.memory_space<vmem>>, vector<1x2x128xf32>
    %54 = vector.shape_cast %53 : vector<1x2x128xf32> to vector<2x128xf32>
    %55 = arith.addf %52, %54 : vector<2x128xf32>
    %56 = arith.negf %55 : vector<2x128xf32>
    %57 = math.exp %56 : vector<2x128xf32>
    %cst_16 = arith.constant 1.000000e+00 : f32
    %58 = vector.broadcast %cst_16 : f32 to vector<2x128xf32>
    %59 = arith.addf %58, %57 : vector<2x128xf32>
    %60 = arith.divf %58, %59 : vector<2x128xf32>
    %61 = math.tanh %55 : vector<2x128xf32>
    %62 = arith.select %6, %61, %60 : vector<2x128xi1>, vector<2x128xf32>
    %63 = vector.extract_strided_slice %62 {offsets = [0, 0], sizes = [2, 32], strides = [1, 1]} : vector<2x128xf32> to vector<2x32xf32>
    %64 = vector.extract_strided_slice %62 {offsets = [0, 32], sizes = [2, 32], strides = [1, 1]} : vector<2x128xf32> to vector<2x32xf32>
    %65 = vector.extract_strided_slice %62 {offsets = [0, 64], sizes = [2, 32], strides = [1, 1]} : vector<2x128xf32> to vector<2x32xf32>
    %66 = vector.extract_strided_slice %62 {offsets = [0, 96], sizes = [2, 32], strides = [1, 1]} : vector<2x128xf32> to vector<2x32xf32>
    %67 = arith.mulf %64, %48 : vector<2x32xf32>
    %68 = arith.mulf %63, %65 : vector<2x32xf32>
    %69 = arith.addf %67, %68 : vector<2x32xf32>
    %70 = math.tanh %69 : vector<2x32xf32>
    %71 = arith.mulf %66, %70 : vector<2x32xf32>
    %72 = arith.truncf %71 : vector<2x32xf32> to vector<2x32xbf16>
    %cst_17 = arith.constant dense<0.000000e+00> : vector<2x128xf32>
    %73 = tpu.matmul %72, %0, %cst_17 {dimension_numbers = #tpu.dot_dimension_numbers<[1], [0], [0], [1], [0, 0, 1, 1], [], []>} : vector<2x32xbf16>, vector<32x128xbf16>, vector<2x128xf32> -> vector<2x128xf32>
    %c3 = arith.constant 3 : index
    %c0_18 = arith.constant 0 : index
    %c0_19 = arith.constant 0 : index
    %74 = vector.load %arg1[%c3, %c0_18, %c0_19] : memref<8x2x128xf32, #tpu.memory_space<vmem>>, vector<1x2x128xf32>
    %75 = vector.shape_cast %74 : vector<1x2x128xf32> to vector<2x128xf32>
    %76 = arith.addf %73, %75 : vector<2x128xf32>
    %77 = arith.negf %76 : vector<2x128xf32>
    %78 = math.exp %77 : vector<2x128xf32>
    %cst_20 = arith.constant 1.000000e+00 : f32
    %79 = vector.broadcast %cst_20 : f32 to vector<2x128xf32>
    %80 = arith.addf %79, %78 : vector<2x128xf32>
    %81 = arith.divf %79, %80 : vector<2x128xf32>
    %82 = math.tanh %76 : vector<2x128xf32>
    %83 = arith.select %6, %82, %81 : vector<2x128xi1>, vector<2x128xf32>
    %84 = vector.extract_strided_slice %83 {offsets = [0, 0], sizes = [2, 32], strides = [1, 1]} : vector<2x128xf32> to vector<2x32xf32>
    %85 = vector.extract_strided_slice %83 {offsets = [0, 32], sizes = [2, 32], strides = [1, 1]} : vector<2x128xf32> to vector<2x32xf32>
    %86 = vector.extract_strided_slice %83 {offsets = [0, 64], sizes = [2, 32], strides = [1, 1]} : vector<2x128xf32> to vector<2x32xf32>
    %87 = vector.extract_strided_slice %83 {offsets = [0, 96], sizes = [2, 32], strides = [1, 1]} : vector<2x128xf32> to vector<2x32xf32>
    %88 = arith.mulf %85, %69 : vector<2x32xf32>
    %89 = arith.mulf %84, %86 : vector<2x32xf32>
    %90 = arith.addf %88, %89 : vector<2x32xf32>
    %91 = math.tanh %90 : vector<2x32xf32>
    %92 = arith.mulf %87, %91 : vector<2x32xf32>
    %93 = arith.truncf %92 : vector<2x32xf32> to vector<2x32xbf16>
    %cst_21 = arith.constant dense<0.000000e+00> : vector<2x128xf32>
    %94 = tpu.matmul %93, %0, %cst_21 {dimension_numbers = #tpu.dot_dimension_numbers<[1], [0], [0], [1], [0, 0, 1, 1], [], []>} : vector<2x32xbf16>, vector<32x128xbf16>, vector<2x128xf32> -> vector<2x128xf32>
    %c4 = arith.constant 4 : index
    %c0_22 = arith.constant 0 : index
    %c0_23 = arith.constant 0 : index
    %95 = vector.load %arg1[%c4, %c0_22, %c0_23] : memref<8x2x128xf32, #tpu.memory_space<vmem>>, vector<1x2x128xf32>
    %96 = vector.shape_cast %95 : vector<1x2x128xf32> to vector<2x128xf32>
    %97 = arith.addf %94, %96 : vector<2x128xf32>
    %98 = arith.negf %97 : vector<2x128xf32>
    %99 = math.exp %98 : vector<2x128xf32>
    %cst_24 = arith.constant 1.000000e+00 : f32
    %100 = vector.broadcast %cst_24 : f32 to vector<2x128xf32>
    %101 = arith.addf %100, %99 : vector<2x128xf32>
    %102 = arith.divf %100, %101 : vector<2x128xf32>
    %103 = math.tanh %97 : vector<2x128xf32>
    %104 = arith.select %6, %103, %102 : vector<2x128xi1>, vector<2x128xf32>
    %105 = vector.extract_strided_slice %104 {offsets = [0, 0], sizes = [2, 32], strides = [1, 1]} : vector<2x128xf32> to vector<2x32xf32>
    %106 = vector.extract_strided_slice %104 {offsets = [0, 32], sizes = [2, 32], strides = [1, 1]} : vector<2x128xf32> to vector<2x32xf32>
    %107 = vector.extract_strided_slice %104 {offsets = [0, 64], sizes = [2, 32], strides = [1, 1]} : vector<2x128xf32> to vector<2x32xf32>
    %108 = vector.extract_strided_slice %104 {offsets = [0, 96], sizes = [2, 32], strides = [1, 1]} : vector<2x128xf32> to vector<2x32xf32>
    %109 = arith.mulf %106, %90 : vector<2x32xf32>
    %110 = arith.mulf %105, %107 : vector<2x32xf32>
    %111 = arith.addf %109, %110 : vector<2x32xf32>
    %112 = math.tanh %111 : vector<2x32xf32>
    %113 = arith.mulf %108, %112 : vector<2x32xf32>
    %114 = arith.truncf %113 : vector<2x32xf32> to vector<2x32xbf16>
    %cst_25 = arith.constant dense<0.000000e+00> : vector<2x128xf32>
    %115 = tpu.matmul %114, %0, %cst_25 {dimension_numbers = #tpu.dot_dimension_numbers<[1], [0], [0], [1], [0, 0, 1, 1], [], []>} : vector<2x32xbf16>, vector<32x128xbf16>, vector<2x128xf32> -> vector<2x128xf32>
    %c5 = arith.constant 5 : index
    %c0_26 = arith.constant 0 : index
    %c0_27 = arith.constant 0 : index
    %116 = vector.load %arg1[%c5, %c0_26, %c0_27] : memref<8x2x128xf32, #tpu.memory_space<vmem>>, vector<1x2x128xf32>
    %117 = vector.shape_cast %116 : vector<1x2x128xf32> to vector<2x128xf32>
    %118 = arith.addf %115, %117 : vector<2x128xf32>
    %119 = arith.negf %118 : vector<2x128xf32>
    %120 = math.exp %119 : vector<2x128xf32>
    %cst_28 = arith.constant 1.000000e+00 : f32
    %121 = vector.broadcast %cst_28 : f32 to vector<2x128xf32>
    %122 = arith.addf %121, %120 : vector<2x128xf32>
    %123 = arith.divf %121, %122 : vector<2x128xf32>
    %124 = math.tanh %118 : vector<2x128xf32>
    %125 = arith.select %6, %124, %123 : vector<2x128xi1>, vector<2x128xf32>
    %126 = vector.extract_strided_slice %125 {offsets = [0, 0], sizes = [2, 32], strides = [1, 1]} : vector<2x128xf32> to vector<2x32xf32>
    %127 = vector.extract_strided_slice %125 {offsets = [0, 32], sizes = [2, 32], strides = [1, 1]} : vector<2x128xf32> to vector<2x32xf32>
    %128 = vector.extract_strided_slice %125 {offsets = [0, 64], sizes = [2, 32], strides = [1, 1]} : vector<2x128xf32> to vector<2x32xf32>
    %129 = vector.extract_strided_slice %125 {offsets = [0, 96], sizes = [2, 32], strides = [1, 1]} : vector<2x128xf32> to vector<2x32xf32>
    %130 = arith.mulf %127, %111 : vector<2x32xf32>
    %131 = arith.mulf %126, %128 : vector<2x32xf32>
    %132 = arith.addf %130, %131 : vector<2x32xf32>
    %133 = math.tanh %132 : vector<2x32xf32>
    %134 = arith.mulf %129, %133 : vector<2x32xf32>
    %135 = arith.truncf %134 : vector<2x32xf32> to vector<2x32xbf16>
    %cst_29 = arith.constant dense<0.000000e+00> : vector<2x128xf32>
    %136 = tpu.matmul %135, %0, %cst_29 {dimension_numbers = #tpu.dot_dimension_numbers<[1], [0], [0], [1], [0, 0, 1, 1], [], []>} : vector<2x32xbf16>, vector<32x128xbf16>, vector<2x128xf32> -> vector<2x128xf32>
    %c6 = arith.constant 6 : index
    %c0_30 = arith.constant 0 : index
    %c0_31 = arith.constant 0 : index
    %137 = vector.load %arg1[%c6, %c0_30, %c0_31] : memref<8x2x128xf32, #tpu.memory_space<vmem>>, vector<1x2x128xf32>
    %138 = vector.shape_cast %137 : vector<1x2x128xf32> to vector<2x128xf32>
    %139 = arith.addf %136, %138 : vector<2x128xf32>
    %140 = arith.negf %139 : vector<2x128xf32>
    %141 = math.exp %140 : vector<2x128xf32>
    %cst_32 = arith.constant 1.000000e+00 : f32
    %142 = vector.broadcast %cst_32 : f32 to vector<2x128xf32>
    %143 = arith.addf %142, %141 : vector<2x128xf32>
    %144 = arith.divf %142, %143 : vector<2x128xf32>
    %145 = math.tanh %139 : vector<2x128xf32>
    %146 = arith.select %6, %145, %144 : vector<2x128xi1>, vector<2x128xf32>
    %147 = vector.extract_strided_slice %146 {offsets = [0, 0], sizes = [2, 32], strides = [1, 1]} : vector<2x128xf32> to vector<2x32xf32>
    %148 = vector.extract_strided_slice %146 {offsets = [0, 32], sizes = [2, 32], strides = [1, 1]} : vector<2x128xf32> to vector<2x32xf32>
    %149 = vector.extract_strided_slice %146 {offsets = [0, 64], sizes = [2, 32], strides = [1, 1]} : vector<2x128xf32> to vector<2x32xf32>
    %150 = vector.extract_strided_slice %146 {offsets = [0, 96], sizes = [2, 32], strides = [1, 1]} : vector<2x128xf32> to vector<2x32xf32>
    %151 = arith.mulf %148, %132 : vector<2x32xf32>
    %152 = arith.mulf %147, %149 : vector<2x32xf32>
    %153 = arith.addf %151, %152 : vector<2x32xf32>
    %154 = math.tanh %153 : vector<2x32xf32>
    %155 = arith.mulf %150, %154 : vector<2x32xf32>
    %156 = arith.truncf %155 : vector<2x32xf32> to vector<2x32xbf16>
    %cst_33 = arith.constant dense<0.000000e+00> : vector<2x128xf32>
    %157 = tpu.matmul %156, %0, %cst_33 {dimension_numbers = #tpu.dot_dimension_numbers<[1], [0], [0], [1], [0, 0, 1, 1], [], []>} : vector<2x32xbf16>, vector<32x128xbf16>, vector<2x128xf32> -> vector<2x128xf32>
    %c7 = arith.constant 7 : index
    %c0_34 = arith.constant 0 : index
    %c0_35 = arith.constant 0 : index
    %158 = vector.load %arg1[%c7, %c0_34, %c0_35] : memref<8x2x128xf32, #tpu.memory_space<vmem>>, vector<1x2x128xf32>
    %159 = vector.shape_cast %158 : vector<1x2x128xf32> to vector<2x128xf32>
    %160 = arith.addf %157, %159 : vector<2x128xf32>
    %161 = arith.negf %160 : vector<2x128xf32>
    %162 = math.exp %161 : vector<2x128xf32>
    %cst_36 = arith.constant 1.000000e+00 : f32
    %163 = vector.broadcast %cst_36 : f32 to vector<2x128xf32>
    %164 = arith.addf %163, %162 : vector<2x128xf32>
    %165 = arith.divf %163, %164 : vector<2x128xf32>
    %166 = math.tanh %160 : vector<2x128xf32>
    %167 = arith.select %6, %166, %165 : vector<2x128xi1>, vector<2x128xf32>
    %168 = vector.extract_strided_slice %167 {offsets = [0, 0], sizes = [2, 32], strides = [1, 1]} : vector<2x128xf32> to vector<2x32xf32>
    %169 = vector.extract_strided_slice %167 {offsets = [0, 32], sizes = [2, 32], strides = [1, 1]} : vector<2x128xf32> to vector<2x32xf32>
    %170 = vector.extract_strided_slice %167 {offsets = [0, 64], sizes = [2, 32], strides = [1, 1]} : vector<2x128xf32> to vector<2x32xf32>
    %171 = vector.extract_strided_slice %167 {offsets = [0, 96], sizes = [2, 32], strides = [1, 1]} : vector<2x128xf32> to vector<2x32xf32>
    %172 = arith.mulf %169, %153 : vector<2x32xf32>
    %173 = arith.mulf %168, %170 : vector<2x32xf32>
    %174 = arith.addf %172, %173 : vector<2x32xf32>
    %175 = math.tanh %174 : vector<2x32xf32>
    %176 = arith.mulf %171, %175 : vector<2x32xf32>
    %c0_37 = arith.constant 0 : index
    %c0_38 = arith.constant 0 : index
    %177 = vector.load %arg8[%c0_37, %c0_38] : memref<2x32xf32, #tpu.memory_space<vmem>>, vector<2x32xf32>
    tpu.vector_store %arg8[%c0_37, %c0_38], %176 {strides = array<i32>} : memref<2x32xf32, #tpu.memory_space<vmem>>, vector<2x32xf32>,
    %c0_39 = arith.constant 0 : index
    %c0_40 = arith.constant 0 : index
    %178 = vector.load %arg9[%c0_39, %c0_40] : memref<2x32xf32, #tpu.memory_space<vmem>>, vector<2x32xf32>
    tpu.vector_store %arg9[%c0_39, %c0_40], %174 {strides = array<i32>} : memref<2x32xf32, #tpu.memory_space<vmem>>, vector<2x32xf32>,
    %c0_41 = arith.constant 0 : index
    %c0_42 = arith.constant 0 : index
    %179 = vector.load %arg5[%c0_41, %c0_42] : memref<32x2xf32, #tpu.memory_space<vmem>>, vector<32x2xf32>
    %cst_43 = arith.constant dense<0.000000e+00> : vector<2x2xf32>
    %180 = tpu.matmul %176, %179, %cst_43 {dimension_numbers = #tpu.dot_dimension_numbers<[1], [0], [0], [1], [0, 0, 1, 1], [], []>} : vector<2x32xf32>, vector<32x2xf32>, vector<2x2xf32> -> vector<2x2xf32>
    %c0_44 = arith.constant 0 : index
    %c0_45 = arith.constant 0 : index
    %181 = vector.load %arg6[%c0_44, %c0_45] : memref<1x2xf32, #tpu.memory_space<vmem>>, vector<1x2xf32>
    %182 = vector.broadcast %181 : vector<1x2xf32> to vector<2x2xf32>
    %183 = arith.addf %180, %182 : vector<2x2xf32>
    %c0_46 = arith.constant 0 : index
    %c0_47 = arith.constant 0 : index
    %184 = vector.load %arg7[%c0_46, %c0_47] : memref<2x2xf32, #tpu.memory_space<vmem>>, vector<2x2xf32>
    tpu.vector_store %arg7[%c0_46, %c0_47], %183 {strides = array<i32>} : memref<2x2xf32, #tpu.memory_space<vmem>>, vector<2x2xf32>,
    return
  }
  func.func @transform_0(%arg0: i32) -> (i32, i32, i32) {
    %c0_i32 = arith.constant 0 : i32
    %c0_i32_0 = arith.constant 0 : i32
    %c0_i32_1 = arith.constant 0 : i32
    %c0_i32_2 = arith.constant 0 : i32
    return %c0_i32, %c0_i32_0, %c0_i32_1 : i32, i32, i32
  }
  func.func @transform_1(%arg0: i32) -> (i32, i32) {
    %c0_i32 = arith.constant 0 : i32
    %c0_i32_0 = arith.constant 0 : i32
    %c0_i32_1 = arith.constant 0 : i32
    return %c0_i32, %c0_i32_0 : i32, i32
  }
  func.func @transform_2(%arg0: i32) -> (i32, i32) {
    %c0_i32 = arith.constant 0 : i32
    %c0_i32_0 = arith.constant 0 : i32
    %c0_i32_1 = arith.constant 0 : i32
    return %c0_i32, %c0_i32_0 : i32, i32
  }
  func.func @transform_3(%arg0: i32) -> (i32, i32) {
    %c0_i32 = arith.constant 0 : i32
    %c0_i32_0 = arith.constant 0 : i32
    %c0_i32_1 = arith.constant 0 : i32
    return %c0_i32, %c0_i32_0 : i32, i32
  }
  func.func @transform_4(%arg0: i32) -> (i32, i32) {
    %c0_i32 = arith.constant 0 : i32
    %c0_i32_0 = arith.constant 0 : i32
    %c0_i32_1 = arith.constant 0 : i32
    return %c0_i32, %c0_i32_0 : i32, i32
  }
  func.func @transform_5(%arg0: i32) -> (i32, i32) {
    %c0_i32 = arith.constant 0 : i32
    %c0_i32_0 = arith.constant 0 : i32
    %c0_i32_1 = arith.constant 0 : i32
    return %c0_i32, %c0_i32_0 : i32, i32
  }
  func.func @transform_6(%arg0: i32) -> (i32, i32) {
    %c0_i32 = arith.constant 0 : i32
    %c0_i32_0 = arith.constant 0 : i32
    %c0_i32_1 = arith.constant 0 : i32
    return %c0_i32, %c0_i32_0 : i32, i32
  }
  func.func @transform_7(%arg0: i32) -> (i32, i32) {
    %c0_i32 = arith.constant 0 : i32
    %c0_i32_0 = arith.constant 0 : i32
    %c0_i32_1 = arith.constant 0 : i32
    return %c0_i32, %c0_i32_0 : i32, i32
  }
  func.func @transform_8(%arg0: i32) -> (i32, i32) {
    %c0_i32 = arith.constant 0 : i32
    %c0_i32_0 = arith.constant 0 : i32
    %c0_i32_1 = arith.constant 0 : i32
    return %c0_i32, %c0_i32_0 : i32, i32
  }
}

</mosaic_0001>

<bundles_post_ra>
// kernel: squeeze.1
= control target key start
LH: loop header
LB: loop body
LE: loop exit
PB: predicated region body
PF: predicated region fallthrough
CT: control target
= control target key end

     0   :  { %s20_s0 = inlined_call_operand.<no memory space> [shape: f32[], index: 0, kind: input, shape index: {}]   ;;  %s21_s1 = inlined_call_operand.vmem [shape: f32[2,32], index: 1, kind: output, shape index: {}]  }
   0x1   :  { %v2_v0 = vstv %s20_s0 }
   0x2   :  { %3 = vst [vmem:[%s21_s1] sm:$0x3] %v2_v0 }

// kernel: tiny_rnn_forward.1
= control target key start
LH: loop header
LB: loop body
LE: loop exit
PB: predicated region body
PF: predicated region fallthrough
CT: control target
= control target key end

     0   :  { %14 = vsyncpa [#allocation3], 0  ;;  %s977_s0 = inlined_call_operand.vmem [shape: f32[8,2,128], index: 0, kind: input, shape index: {}]   ;;  %s978_s1 = inlined_call_operand.vmem [shape: f32[2,32], index: 1, kind: input, shape index: {}]   ;;  %s979_s2 = inlined_call_operand.vmem [shape: f32[2,32], index: 2, kind: input, shape index: {}]   ;;  %s980_s3 = inlined_call_operand.vmem [shape: bf16[32,128], index: 3, kind: input, shape index: {}]   ;;  %s981_s4 = inlined_call_operand.vmem [shape: f32[32,2], index: 4, kind: input, shape index: {}]   ;;  %s982_s5 = inlined_call_operand.vmem [shape: f32[1,2], index: 5, kind: input, shape index: {}]   ;;  %s983_s6 = inlined_call_operand.hbm [shape: f32[2,2], index: 6, kind: output, shape index: {0}]   ;;  %s984_s7 = inlined_call_operand.hbm [shape: f32[2,32], index: 7, kind: output, shape index: {1}]   ;;  %s985_s8 = inlined_call_operand.hbm [shape: f32[2,32], index: 8, kind: output, shape index: {2}]  }
   0x1   :  { %v656_v0 = vld [vmem:[%s980_s3 + $0x8] sm:$0xff] }
   0x2   :  { %15 = vsyncpa [#allocation5], 0  ;;  %64 = vmatpush.bf16.msra.mxu0 %v656_v0  ;;  %v655_v1 = vld [vmem:[%s980_s3] sm:$0xff]  ;;  %128 = vmatpush.bf16.msra.mxu1 %v656_v0  ;;  %vm54_vm0 = vcmask 261120   ;;  %v33_v11 = vlaneseq  ;;  %s804_s11 = smov 64   ;;  %s805_s14 = smov 32  }
   0x3   :  { %v38_v2 = vld [vmem:[%s978_s1] sm:$0x3]  ;;  %188 = vmatpush.bf16.msra.mxu2 %v656_v0  ;;  %248 = vmatpush.bf16.msra.mxu3 %v656_v0  ;;  %v633_v38 = vld [vmem:[%s977_s0 + $0x2] sm:$0x3]  ;;  %v547_v19 = vld [vmem:[%s981_s4 + $0x18] sm:$0xff]  ;;  %s594_s16 = sshll.u32 %s984_s7, 4  ;;  %s595_s16 = int_to_ptr.hbm [resolvable:$true] %s594_s16 }
   0x4   :  { %v40_v3 = vpack.c.bf16 %v38_v2, %v38_v2  ;;  %v41_v4 = vld [vmem:[%s977_s0] sm:$0x3]  ;;  %v34_v13 = vand.u32 127, %v33_v11  ;;  %s605_s20 = sshll.u32 %s985_s8, 4  ;;  %s809_s7 = smov [#allocation2]   ;;  %s606_s20 = int_to_ptr.hbm [resolvable:$true] %s605_s20 }
   0x5   :  { %v39_v26 = vld [vmem:[%s979_s2] sm:$0x3]  ;;  %s581_s22 = sshll.u32 %s809_s7, 4  ;;  %s583_s25 = sshll.u32 %s983_s6, 4  ;;  %s582_s22 = int_to_ptr.vmem [resolvable:$true] %s581_s22  ;;  %s584_s25 = int_to_ptr.hbm [resolvable:$true] %s583_s25 }
   0x6   :  { %65 = vmatpush.bf16.msra.mxu0 %v655_v1  ;;  %129 = vmatpush.bf16.msra.mxu1 %v655_v1  ;;  %vm35_vm1 = vcmp.ge.s32.totalorder %v34_v13, 64  ;;  %vm36_vm2 = vcmp.lt.s32.totalorder %v34_v13, 96 }
   0x7   :  { %189 = vmatpush.bf16.msra.mxu2 %v655_v1  ;;  %249 = vmatpush.bf16.msra.mxu3 %v655_v1  ;;  %vm868_vm4 = vmand %vm35_vm1, %vm36_vm2 }
   0x9   :  { %631 = vmatmul.msk.bf16.vlgmr.msra.gmra.mxu0 %vm54_vm0, %v40_v3  ;;  %v636_v3 = vld [vmem:[%s977_s0 + $0x4] sm:$0x3] }
   0xa   :  { %308 = vmatpush.bf16.msrb.mxu0 %v656_v0  ;;  %368 = vmatpush.bf16.msrb.mxu1 %v656_v0 }
   0xb   :  { %428 = vmatpush.bf16.msrb.mxu2 %v656_v0  ;;  %488 = vmatpush.bf16.msrb.mxu3 %v656_v0 }
   0xe   :  { %309 = vmatpush.bf16.msrb.mxu0 %v655_v1  ;;  %369 = vmatpush.bf16.msrb.mxu1 %v655_v1 }
   0xf   :  { %429 = vmatpush.bf16.msrb.mxu2 %v655_v1  ;;  %489 = vmatpush.bf16.msrb.mxu3 %v655_v1 }
  0x12   :  { %566 = vmatpush.msra.mxu0 %v547_v19 }
  0x86   :  { %v67_v5 = vpop.f32.mrf.mxu0 }
  0x87   :  { %v68_v6 = vadd.f32 %v67_v5, %v41_v4 }
  0x89   :  { %v632_v7 = vmul.f32 -1.442695, %v68_v6 }
  0x8b   :  { %664 = vpow2.f32 %v632_v7 }
  0x8e   :  { %v69_v8 = vpop.f32.mrf.mxu0 }
  0x91   :  { %v665_v9 = vpop.eup %664 }
  0x92   :  { %v74_v10 = vadd.f32 1.0, %v665_v9 }
  0x94   :  { %666 = vrcp.f32 %v74_v10  ;;  %v86_v16 = vand.u32 2147483648, %v74_v10  ;;  %v84_v18 = vand.u32 2147483647, %v74_v10  ;;  %vm80_vm5 = vweird.f32 %v74_v10 }
  0x95   :  { %668 = vtanh.f32 %v68_v6 }
  0x96   :  { %v87_v21 = vor.u32 1.1754944e-38, %v86_v16  ;;  %vm85_vm7 = vcmp.eq.f32.partialorder %v84_v18, 8.507059e+37 }
  0x9a   :  { %v667_v12 = vpop.eup %666 }
  0x9b   :  { %v76_v14 = vmul.f32 %v667_v12, %v74_v10  ;;  %vm81_vm3 = vweird.f32 %v667_v12  ;;  %v669_v23 = vpop.eup %668 }
  0x9c   :  { %vm82_vm6 = vmor %vm80_vm5, %vm81_vm3 }
  0x9d   :  { %v77_v15 = vsub.f32 1.0, %v76_v14 }
  0x9f   :  { %v78_v17 = vmul.f32 %v667_v12, %v77_v15 }
  0xa1   :  { %v79_v20 = vadd.f32 %v667_v12, %v78_v17 }
  0xa3   :  { %v83_v22 = vsel %vm82_vm6, %v667_v12, %v79_v20 }
  0xa4   :  { %v88_v24 = vsel %vm85_vm7, %v87_v21, %v83_v22 }
  0xa5   :  { %v91_v25 = vsel %vm868_vm4, %v669_v23, %v88_v24 }
  0xa6   :  { %98 = vrot.lane.b32.xlu0 %v91_v25, %s804_s11 }
  0xae   :  { %93 = vrot.lane.b32.xlu0 %v39_v26, %s805_s14 }
 0x118   :  { %v99_v27 = vpop.permute.xlu0 %98 }
 0x119   :  { %v101_v28 = vmul.f32 %v99_v27, %v91_v25 }
 0x11b   :  { %103 = vrot.lane.b32.xlu1 %v101_v28, %s805_s14 }
 0x120   :  { %v94_v29 = vpop.permute.xlu0 %93 }
 0x121   :  { %v96_v30 = vmul.f32 %v94_v29, %v91_v25 }
 0x18d   :  { %v104_v31 = vpop.permute.xlu1 %103 }
 0x18e   :  { %v106_v32 = vadd.f32 %v104_v31, %v96_v30 }
 0x190   :  { %670 = vtanh.f32 %v106_v32 }
 0x196   :  { %v671_v33 = vpop.eup %670 }
 0x197   :  { %109 = vrot.lane.b32.xlu1 %v671_v33, %s804_s11  ;;  %v639_v33 = vld [vmem:[%s977_s0 + $0x6] sm:$0x3] }
 0x209   :  { %v110_v34 = vpop.permute.xlu1 %109 }
 0x20a   :  { %v112_v35 = vmul.f32 %v110_v34, %v91_v25 }
 0x20c   :  { %v113_v36 = vpack.c.bf16 %v112_v35, %v112_v35 }
 0x20e   :  { %117 = vrot.lane.b32.xlu2 %v113_v36, %s805_s14 }
 0x268   :  { %v118_v37 = vpop.permute.xlu2 %117 }
 0x269   :  { %634 = vmatmul.msk.bf16.vlgmr.msra.gmra.mxu1 %vm54_vm0, %v118_v37 }
 0x2e6   :  { %v131_v39 = vpop.f32.mrf.mxu1 }
 0x2e7   :  { %v132_v40 = vadd.f32 %v633_v38, %v131_v39 }
 0x2e9   :  { %v635_v41 = vmul.f32 -1.442695, %v132_v40 }
 0x2eb   :  { %672 = vpow2.f32 %v635_v41 }
 0x2ee   :  { %v133_v42 = vpop.f32.mrf.mxu1 }
 0x2f1   :  { %v673_v43 = vpop.eup %672 }
 0x2f2   :  { %v138_v44 = vadd.f32 1.0, %v673_v43 }
 0x2f4   :  { %674 = vrcp.f32 %v138_v44  ;;  %v150_v48 = vand.u32 2147483648, %v138_v44  ;;  %v148_v50 = vand.u32 2147483647, %v138_v44  ;;  %vm144_vm9 = vweird.f32 %v138_v44 }
 0x2f5   :  { %676 = vtanh.f32 %v132_v40 }
 0x2f6   :  { %v151_v52 = vor.u32 1.1754944e-38, %v150_v48  ;;  %vm149_vm11 = vcmp.eq.f32.partialorder %v148_v50, 8.507059e+37 }
 0x2fa   :  { %v675_v45 = vpop.eup %674 }
 0x2fb   :  { %v140_v46 = vmul.f32 %v675_v45, %v138_v44  ;;  %vm145_vm8 = vweird.f32 %v675_v45  ;;  %v677_v54 = vpop.eup %676 }
 0x2fc   :  { %vm146_vm10 = vmor %vm144_vm9, %vm145_vm8 }
 0x2fd   :  { %v141_v47 = vsub.f32 1.0, %v140_v46 }
 0x2ff   :  { %v142_v49 = vmul.f32 %v675_v45, %v141_v47 }
 0x301   :  { %v143_v51 = vadd.f32 %v675_v45, %v142_v49 }
 0x303   :  { %v147_v53 = vsel %vm146_vm10, %v675_v45, %v143_v51 }
 0x304   :  { %v152_v55 = vsel %vm149_vm11, %v151_v52, %v147_v53 }
 0x305   :  { %v155_v56 = vsel %vm868_vm4, %v677_v54, %v152_v55 }
 0x306   :  { %158 = vrot.lane.b32.xlu2 %v155_v56, %s804_s11  ;;  %v156_v59 = vmul.f32 %v155_v56, %v106_v32 }
 0x360   :  { %v159_v57 = vpop.permute.xlu2 %158 }
 0x361   :  { %v161_v58 = vmul.f32 %v159_v57, %v155_v56 }
 0x363   :  { %163 = vrot.lane.b32.xlu0 %v161_v58, %s805_s14 }
 0x3d5   :  { %v164_v60 = vpop.permute.xlu0 %163 }
 0x3d6   :  { %v166_v61 = vadd.f32 %v164_v60, %v156_v59 }
 0x3d8   :  { %678 = vtanh.f32 %v166_v61 }
 0x3de   :  { %v679_v62 = vpop.eup %678 }
 0x3df   :  { %169 = vrot.lane.b32.xlu1 %v679_v62, %s804_s11  ;;  %v642_v62 = vld [vmem:[%s977_s0 + $0x8] sm:$0x3] }
 0x451   :  { %v170_v63 = vpop.permute.xlu1 %169 }
 0x452   :  { %v172_v0 = vmul.f32 %v170_v63, %v155_v56 }
 0x454   :  { %v173_v1 = vpack.c.bf16 %v172_v0, %v172_v0 }
 0x456   :  { %177 = vrot.lane.b32.xlu2 %v173_v1, %s805_s14 }
 0x4b0   :  { %v178_v2 = vpop.permute.xlu2 %177 }
 0x4b1   :  { %637 = vmatmul.msk.bf16.vlgmr.msra.gmra.mxu2 %vm54_vm0, %v178_v2 }
 0x534   :  { %v191_v4 = vpop.f32.mrf.mxu2 }
 0x535   :  { %v192_v5 = vadd.f32 %v636_v3, %v191_v4 }
 0x537   :  { %v638_v6 = vmul.f32 -1.442695, %v192_v5 }
 0x539   :  { %680 = vpow2.f32 %v638_v6 }
 0x53c   :  { %v193_v7 = vpop.f32.mrf.mxu2 }
 0x53f   :  { %v681_v8 = vpop.eup %680 }
 0x540   :  { %v198_v9 = vadd.f32 1.0, %v681_v8 }
 0x542   :  { %682 = vrcp.f32 %v198_v9  ;;  %v210_v13 = vand.u32 2147483648, %v198_v9  ;;  %v208_v15 = vand.u32 2147483647, %v198_v9  ;;  %vm204_vm13 = vweird.f32 %v198_v9 }
 0x543   :  { %684 = vtanh.f32 %v192_v5 }
 0x544   :  { %v211_v17 = vor.u32 1.1754944e-38, %v210_v13  ;;  %vm209_vm15 = vcmp.eq.f32.partialorder %v208_v15, 8.507059e+37 }
 0x548   :  { %v683_v10 = vpop.eup %682 }
 0x549   :  { %v200_v11 = vmul.f32 %v683_v10, %v198_v9  ;;  %vm205_vm12 = vweird.f32 %v683_v10  ;;  %v685_v20 = vpop.eup %684 }
 0x54a   :  { %vm206_vm14 = vmor %vm204_vm13, %vm205_vm12 }
 0x54b   :  { %v201_v12 = vsub.f32 1.0, %v200_v11 }
 0x54d   :  { %v202_v14 = vmul.f32 %v683_v10, %v201_v12 }
 0x54f   :  { %v203_v16 = vadd.f32 %v683_v10, %v202_v14 }
 0x551   :  { %v207_v18 = vsel %vm206_vm14, %v683_v10, %v203_v16 }
 0x552   :  { %v212_v21 = vsel %vm209_vm15, %v211_v17, %v207_v18 }
 0x553   :  { %v215_v22 = vsel %vm868_vm4, %v685_v20, %v212_v21 }
 0x554   :  { %218 = vrot.lane.b32.xlu0 %v215_v22, %s804_s11  ;;  %v216_v25 = vmul.f32 %v215_v22, %v166_v61 }
 0x5c6   :  { %v219_v23 = vpop.permute.xlu0 %218 }
 0x5c7   :  { %v221_v24 = vmul.f32 %v219_v23, %v215_v22 }
 0x5c9   :  { %223 = vrot.lane.b32.xlu1 %v221_v24, %s805_s14 }
 0x63b   :  { %v224_v26 = vpop.permute.xlu1 %223 }
 0x63c   :  { %v226_v27 = vadd.f32 %v224_v26, %v216_v25 }
 0x63e   :  { %686 = vtanh.f32 %v226_v27 }
 0x644   :  { %v687_v28 = vpop.eup %686 }
 0x645   :  { %229 = vrot.lane.b32.xlu2 %v687_v28, %s804_s11  ;;  %v645_v28 = vld [vmem:[%s977_s0 + $0xa] sm:$0x3] }
 0x69f   :  { %v230_v29 = vpop.permute.xlu2 %229 }
 0x6a0   :  { %v232_v30 = vmul.f32 %v230_v29, %v215_v22 }
 0x6a2   :  { %v233_v31 = vpack.c.bf16 %v232_v30, %v232_v30 }
 0x6a4   :  { %237 = vrot.lane.b32.xlu0 %v233_v31, %s805_s14 }
 0x716   :  { %v238_v32 = vpop.permute.xlu0 %237 }
 0x717   :  { %640 = vmatmul.msk.bf16.vlgmr.msra.gmra.mxu3 %vm54_vm0, %v238_v32 }
 0x79a   :  { %v251_v34 = vpop.f32.mrf.mxu3 }
 0x79b   :  { %v252_v35 = vadd.f32 %v639_v33, %v251_v34 }
 0x79d   :  { %v641_v36 = vmul.f32 -1.442695, %v252_v35 }
 0x79f   :  { %688 = vpow2.f32 %v641_v36 }
 0x7a2   :  { %v253_v37 = vpop.f32.mrf.mxu3 }
 0x7a5   :  { %v689_v38 = vpop.eup %688 }
 0x7a6   :  { %v258_v39 = vadd.f32 1.0, %v689_v38 }
 0x7a8   :  { %690 = vrcp.f32 %v258_v39  ;;  %v270_v43 = vand.u32 2147483648, %v258_v39  ;;  %v268_v45 = vand.u32 2147483647, %v258_v39  ;;  %vm264_vm2 = vweird.f32 %v258_v39 }
 0x7a9   :  { %692 = vtanh.f32 %v252_v35 }
 0x7aa   :  { %v271_v47 = vor.u32 1.1754944e-38, %v270_v43  ;;  %vm269_vm5 = vcmp.eq.f32.partialorder %v268_v45, 8.507059e+37 }
 0x7ae   :  { %v691_v40 = vpop.eup %690 }
 0x7af   :  { %v260_v41 = vmul.f32 %v691_v40, %v258_v39  ;;  %vm265_vm1 = vweird.f32 %v691_v40  ;;  %v693_v49 = vpop.eup %692 }
 0x7b0   :  { %vm266_vm3 = vmor %vm264_vm2, %vm265_vm1 }
 0x7b1   :  { %v261_v42 = vsub.f32 1.0, %v260_v41 }
 0x7b3   :  { %v262_v44 = vmul.f32 %v691_v40, %v261_v42 }
 0x7b5   :  { %v263_v46 = vadd.f32 %v691_v40, %v262_v44 }
 0x7b7   :  { %v267_v48 = vsel %vm266_vm3, %v691_v40, %v263_v46 }
 0x7b8   :  { %v272_v50 = vsel %vm269_vm5, %v271_v47, %v267_v48 }
 0x7b9   :  { %v275_v51 = vsel %vm868_vm4, %v693_v49, %v272_v50 }
 0x7ba   :  { %278 = vrot.lane.b32.xlu1 %v275_v51, %s804_s11  ;;  %v276_v54 = vmul.f32 %v275_v51, %v226_v27 }
 0x82c   :  { %v279_v52 = vpop.permute.xlu1 %278 }
 0x82d   :  { %v281_v53 = vmul.f32 %v279_v52, %v275_v51 }
 0x82f   :  { %283 = vrot.lane.b32.xlu2 %v281_v53, %s805_s14 }
 0x889   :  { %v284_v55 = vpop.permute.xlu2 %283 }
 0x88a   :  { %v286_v56 = vadd.f32 %v284_v55, %v276_v54 }
 0x88c   :  { %694 = vtanh.f32 %v286_v56 }
 0x892   :  { %v695_v57 = vpop.eup %694 }
 0x893   :  { %289 = vrot.lane.b32.xlu0 %v695_v57, %s804_s11  ;;  %v648_v57 = vld [vmem:[%s977_s0 + $0xc] sm:$0x3] }
 0x905   :  { %v290_v58 = vpop.permute.xlu0 %289 }
 0x906   :  { %v292_v59 = vmul.f32 %v290_v58, %v275_v51 }
 0x908   :  { %v293_v60 = vpack.c.bf16 %v292_v59, %v292_v59 }
 0x90a   :  { %297 = vrot.lane.b32.xlu1 %v293_v60, %s805_s14 }
 0x97c   :  { %v298_v61 = vpop.permute.xlu1 %297 }
 0x97d   :  { %643 = vmatmul.msk.bf16.vlgmr.msrb.gmra.mxu0 %vm54_vm0, %v298_v61 }
 0x9fa   :  { %v311_v63 = vpop.f32.mrf.mxu0 }
 0x9fb   :  { %v312_v0 = vadd.f32 %v642_v62, %v311_v63 }
 0x9fd   :  { %v644_v1 = vmul.f32 -1.442695, %v312_v0 }
 0x9ff   :  { %696 = vpow2.f32 %v644_v1 }
 0xa02   :  { %v313_v2 = vpop.f32.mrf.mxu0 }
 0xa05   :  { %v697_v3 = vpop.eup %696 }
 0xa06   :  { %v318_v4 = vadd.f32 1.0, %v697_v3 }
 0xa08   :  { %698 = vrcp.f32 %v318_v4  ;;  %v330_v8 = vand.u32 2147483648, %v318_v4  ;;  %v328_v10 = vand.u32 2147483647, %v318_v4  ;;  %vm324_vm7 = vweird.f32 %v318_v4 }
 0xa09   :  { %700 = vtanh.f32 %v312_v0 }
 0xa0a   :  { %v331_v12 = vor.u32 1.1754944e-38, %v330_v8  ;;  %vm329_vm9 = vcmp.eq.f32.partialorder %v328_v10, 8.507059e+37 }
 0xa0e   :  { %v699_v5 = vpop.eup %698 }
 0xa0f   :  { %v320_v6 = vmul.f32 %v699_v5, %v318_v4  ;;  %vm325_vm6 = vweird.f32 %v699_v5  ;;  %v701_v14 = vpop.eup %700 }
 0xa10   :  { %vm326_vm8 = vmor %vm324_vm7, %vm325_vm6 }
 0xa11   :  { %v321_v7 = vsub.f32 1.0, %v320_v6 }
 0xa13   :  { %v322_v9 = vmul.f32 %v699_v5, %v321_v7 }
 0xa15   :  { %v323_v11 = vadd.f32 %v699_v5, %v322_v9 }
 0xa17   :  { %v327_v13 = vsel %vm326_vm8, %v699_v5, %v323_v11 }
 0xa18   :  { %v332_v15 = vsel %vm329_vm9, %v331_v12, %v327_v13 }
 0xa19   :  { %v335_v16 = vsel %vm868_vm4, %v701_v14, %v332_v15 }
 0xa1a   :  { %338 = vrot.lane.b32.xlu2 %v335_v16, %s804_s11  ;;  %v336_v20 = vmul.f32 %v335_v16, %v286_v56 }
 0xa74   :  { %v339_v17 = vpop.permute.xlu2 %338 }
 0xa75   :  { %v341_v18 = vmul.f32 %v339_v17, %v335_v16 }
 0xa77   :  { %343 = vrot.lane.b32.xlu0 %v341_v18, %s805_s14 }
 0xae9   :  { %v344_v21 = vpop.permute.xlu0 %343 }
 0xaea   :  { %v346_v22 = vadd.f32 %v344_v21, %v336_v20 }
 0xaec   :  { %702 = vtanh.f32 %v346_v22 }
 0xaf2   :  { %v703_v23 = vpop.eup %702 }
 0xaf3   :  { %349 = vrot.lane.b32.xlu1 %v703_v23, %s804_s11  ;;  %v651_v23 = vld [vmem:[%s977_s0 + $0xe] sm:$0x3]  ;;  %s806_s0 = smov 96  }
 0xb65   :  { %v350_v24 = vpop.permute.xlu1 %349 }
 0xb66   :  { %v352_v25 = vmul.f32 %v350_v24, %v335_v16 }
 0xb68   :  { %v353_v26 = vpack.c.bf16 %v352_v25, %v352_v25 }
 0xb6a   :  { %357 = vrot.lane.b32.xlu2 %v353_v26, %s805_s14 }
 0xbc4   :  { %v358_v27 = vpop.permute.xlu2 %357 }
 0xbc5   :  { %646 = vmatmul.msk.bf16.vlgmr.msrb.gmra.mxu1 %vm54_vm0, %v358_v27 }
 0xc42   :  { %v371_v29 = vpop.f32.mrf.mxu1 }
 0xc43   :  { %v372_v30 = vadd.f32 %v645_v28, %v371_v29 }
 0xc45   :  { %v647_v31 = vmul.f32 -1.442695, %v372_v30 }
 0xc47   :  { %704 = vpow2.f32 %v647_v31 }
 0xc4a   :  { %v373_v32 = vpop.f32.mrf.mxu1 }
 0xc4d   :  { %v705_v33 = vpop.eup %704 }
 0xc4e   :  { %v378_v34 = vadd.f32 1.0, %v705_v33 }
 0xc50   :  { %706 = vrcp.f32 %v378_v34  ;;  %v390_v38 = vand.u32 2147483648, %v378_v34  ;;  %v388_v40 = vand.u32 2147483647, %v378_v34  ;;  %vm384_vm11 = vweird.f32 %v378_v34 }
 0xc51   :  { %708 = vtanh.f32 %v372_v30 }
 0xc52   :  { %v391_v42 = vor.u32 1.1754944e-38, %v390_v38  ;;  %vm389_vm13 = vcmp.eq.f32.partialorder %v388_v40, 8.507059e+37 }
 0xc56   :  { %v707_v35 = vpop.eup %706 }
 0xc57   :  { %v380_v36 = vmul.f32 %v707_v35, %v378_v34  ;;  %vm385_vm10 = vweird.f32 %v707_v35  ;;  %v709_v44 = vpop.eup %708 }
 0xc58   :  { %vm386_vm12 = vmor %vm384_vm11, %vm385_vm10 }
 0xc59   :  { %v381_v37 = vsub.f32 1.0, %v380_v36 }
 0xc5b   :  { %v382_v39 = vmul.f32 %v707_v35, %v381_v37 }
 0xc5d   :  { %v383_v41 = vadd.f32 %v707_v35, %v382_v39 }
 0xc5f   :  { %v387_v43 = vsel %vm386_vm12, %v707_v35, %v383_v41 }
 0xc60   :  { %v392_v45 = vsel %vm389_vm13, %v391_v42, %v387_v43 }
 0xc61   :  { %v395_v46 = vsel %vm868_vm4, %v709_v44, %v392_v45 }
 0xc62   :  { %398 = vrot.lane.b32.xlu0 %v395_v46, %s804_s11  ;;  %v396_v49 = vmul.f32 %v395_v46, %v346_v22 }
 0xcd4   :  { %v399_v47 = vpop.permute.xlu0 %398 }
 0xcd5   :  { %v401_v48 = vmul.f32 %v399_v47, %v395_v46 }
 0xcd7   :  { %403 = vrot.lane.b32.xlu1 %v401_v48, %s805_s14  ;;  %v546_v48 = vld [vmem:[%s981_s4 + $0x10] sm:$0xff] }
 0xcd8   :  { %567 = vmatpush.msra.mxu0 %v546_v48 }
 0xd49   :  { %v404_v50 = vpop.permute.xlu1 %403 }
 0xd4a   :  { %v406_v51 = vadd.f32 %v404_v50, %v396_v49  ;;  %v545_v49 = vld [vmem:[%s981_s4 + $0x8] sm:$0xff]  ;;  %v544_v50 = vld [vmem:[%s981_s4] sm:$0xff]  ;;  %s808_s4 = smov [#allocation6]  }
 0xd4b   :  { %568 = vmatpush.msra.mxu0 %v545_v49  ;;  %s603_s17 = sshll.u32 %s808_s4, 4  ;;  %s604_s17 = int_to_ptr.vmem [resolvable:$true] %s603_s17 }
 0xd4c   :  { %710 = vtanh.f32 %v406_v51 }
 0xd4d   :  { %569 = vmatpush.msra.mxu0 %v544_v50 }
 0xd52   :  { %v711_v52 = vpop.eup %710 }
 0xd53   :  { %409 = vrot.lane.b32.xlu2 %v711_v52, %s804_s11 }
 0xdad   :  { %v410_v53 = vpop.permute.xlu2 %409 }
 0xdae   :  { %v412_v54 = vmul.f32 %v410_v53, %v395_v46 }
 0xdb0   :  { %v413_v55 = vpack.c.bf16 %v412_v54, %v412_v54 }
 0xdb2   :  { %417 = vrot.lane.b32.xlu0 %v413_v55, %s805_s14  ;;  %v663_v55 = vld [vmem:[%s982_s5] ss:$0 sm:$0xff] }
 0xe24   :  { %v418_v56 = vpop.permute.xlu0 %417 }
 0xe25   :  { %649 = vmatmul.msk.bf16.vlgmr.msrb.gmra.mxu2 %vm54_vm0, %v418_v56 }
 0xea8   :  { %v431_v58 = vpop.f32.mrf.mxu2 }
 0xea9   :  { %v432_v59 = vadd.f32 %v648_v57, %v431_v58 }
 0xeab   :  { %v650_v60 = vmul.f32 -1.442695, %v432_v59 }
 0xead   :  { %712 = vpow2.f32 %v650_v60 }
 0xeb0   :  { %v433_v61 = vpop.f32.mrf.mxu2 }
 0xeb3   :  { %v713_v62 = vpop.eup %712 }
 0xeb4   :  { %v438_v63 = vadd.f32 1.0, %v713_v62 }
 0xeb6   :  { %714 = vrcp.f32 %v438_v63  ;;  %v450_v3 = vand.u32 2147483648, %v438_v63  ;;  %v448_v5 = vand.u32 2147483647, %v438_v63  ;;  %vm444_vm15 = vweird.f32 %v438_v63 }
 0xeb7   :  { %716 = vtanh.f32 %v432_v59 }
 0xeb8   :  { %v451_v7 = vor.u32 1.1754944e-38, %v450_v3  ;;  %vm449_vm2 = vcmp.eq.f32.partialorder %v448_v5, 8.507059e+37 }
 0xebc   :  { %v715_v0 = vpop.eup %714 }
 0xebd   :  { %v440_v1 = vmul.f32 %v715_v0, %v438_v63  ;;  %vm445_vm14 = vweird.f32 %v715_v0  ;;  %v717_v9 = vpop.eup %716 }
 0xebe   :  { %vm446_vm1 = vmor %vm444_vm15, %vm445_vm14 }
 0xebf   :  { %v441_v2 = vsub.f32 1.0, %v440_v1 }
 0xec1   :  { %v442_v4 = vmul.f32 %v715_v0, %v441_v2 }
 0xec3   :  { %v443_v6 = vadd.f32 %v715_v0, %v442_v4 }
 0xec5   :  { %v447_v8 = vsel %vm446_vm1, %v715_v0, %v443_v6 }
 0xec6   :  { %v452_v10 = vsel %vm449_vm2, %v451_v7, %v447_v8 }
 0xec7   :  { %v455_v11 = vsel %vm868_vm4, %v717_v9, %v452_v10 }
 0xec8   :  { %458 = vrot.lane.b32.xlu1 %v455_v11, %s804_s11  ;;  %v456_v14 = vmul.f32 %v455_v11, %v406_v51 }
 0xf3a   :  { %v459_v12 = vpop.permute.xlu1 %458 }
 0xf3b   :  { %v461_v13 = vmul.f32 %v459_v12, %v455_v11 }
 0xf3d   :  { %463 = vrot.lane.b32.xlu2 %v461_v13, %s805_s14 }
 0xf97   :  { %v464_v15 = vpop.permute.xlu2 %463 }
 0xf98   :  { %v466_v16 = vadd.f32 %v464_v15, %v456_v14 }
 0xf9a   :  { %718 = vtanh.f32 %v466_v16 }
 0xfa0   :  { %v719_v17 = vpop.eup %718 }
 0xfa1   :  { %469 = vrot.lane.b32.xlu0 %v719_v17, %s804_s11 }
0x1013   :  { %v470_v18 = vpop.permute.xlu0 %469 }
0x1014   :  { %v472_v20 = vmul.f32 %v470_v18, %v455_v11 }
0x1016   :  { %v473_v21 = vpack.c.bf16 %v472_v20, %v472_v20 }
0x1018   :  { %477 = vrot.lane.b32.xlu1 %v473_v21, %s805_s14 }
0x108a   :  { %v478_v22 = vpop.permute.xlu1 %477 }
0x108b   :  { %652 = vmatmul.msk.bf16.vlgmr.msrb.gmra.mxu3 %vm54_vm0, %v478_v22 }
0x110e   :  { %v491_v24 = vpop.f32.mrf.mxu3 }
0x110f   :  { %v492_v25 = vadd.f32 %v651_v23, %v491_v24 }
0x1111   :  { %v653_v26 = vmul.f32 -1.442695, %v492_v25 }
0x1113   :  { %720 = vpow2.f32 %v653_v26 }
0x1116   :  { %v493_v27 = vpop.f32.mrf.mxu3 }
0x1119   :  { %v721_v28 = vpop.eup %720 }
0x111a   :  { %v498_v29 = vadd.f32 1.0, %v721_v28 }
0x111c   :  { %722 = vrcp.f32 %v498_v29  ;;  %v510_v33 = vand.u32 2147483648, %v498_v29  ;;  %v508_v35 = vand.u32 2147483647, %v498_v29  ;;  %vm504_vm5 = vweird.f32 %v498_v29 }
0x111d   :  { %724 = vtanh.f32 %v492_v25 }
0x111e   :  { %v511_v37 = vor.u32 1.1754944e-38, %v510_v33  ;;  %vm509_vm7 = vcmp.eq.f32.partialorder %v508_v35, 8.507059e+37 }
0x1122   :  { %v723_v30 = vpop.eup %722 }
0x1123   :  { %v500_v31 = vmul.f32 %v723_v30, %v498_v29  ;;  %vm505_vm3 = vweird.f32 %v723_v30  ;;  %v725_v39 = vpop.eup %724 }
0x1124   :  { %vm506_vm6 = vmor %vm504_vm5, %vm505_vm3 }
0x1125   :  { %v501_v32 = vsub.f32 1.0, %v500_v31 }
0x1127   :  { %v502_v34 = vmul.f32 %v723_v30, %v501_v32 }
0x1129   :  { %v503_v36 = vadd.f32 %v723_v30, %v502_v34 }
0x112b   :  { %v507_v38 = vsel %vm506_vm6, %v723_v30, %v503_v36 }
0x112c   :  { %v512_v40 = vsel %vm509_vm7, %v511_v37, %v507_v38 }
0x112d   :  { %v515_v41 = vsel %vm868_vm4, %v725_v39, %v512_v40  ;;  %vm537_vm4 = vcmask 254976  }
0x112e   :  { %518 = vrot.lane.b32.xlu2 %v515_v41, %s804_s11  ;;  %v516_v44 = vmul.f32 %v515_v41, %v466_v16 }
0x1188   :  { %v519_v42 = vpop.permute.xlu2 %518 }
0x1189   :  { %v521_v43 = vmul.f32 %v519_v42, %v515_v41 }
0x118b   :  { %523 = vrot.lane.b32.xlu0 %v521_v43, %s805_s14 }
0x11fd   :  { %v524_v45 = vpop.permute.xlu0 %523 }
0x11fe   :  { %v526_v46 = vadd.f32 %v524_v45, %v516_v44 }
0x1200   :  { %726 = vtanh.f32 %v526_v46  ;;  %540 = vrot.lane.b32.xlu0 %v526_v46, %s806_s0 }
0x1206   :  { %v727_v47 = vpop.eup %726 }
0x1207   :  { %529 = vrot.lane.b32.xlu1 %v727_v47, %s804_s11  ;;  %s807_s11 = smov [#allocation4]  }
0x1208   :  { %s592_s13 = sshll.u32 %s807_s11, 4  ;;  %s593_s13 = int_to_ptr.vmem [resolvable:$true] %s592_s13 }
0x1272   :  { %v541_v51 = vpop.permute.xlu0 %540 }
0x1273   :  { %543 = vst.msk [vmem:[#allocation6] sm:$0x3] %vm537_vm4, %v541_v51 }
0x1279   :  { %v530_v52 = vpop.permute.xlu1 %529 }
0x127a   :  { %v532_v53 = vmul.f32 %v530_v52, %v515_v41 }
0x127c   :  { %534 = vrot.lane.b32.xlu2 %v532_v53, %s805_s14 }
0x12d6   :  { %v535_v54 = vpop.permute.xlu2 %534 }
0x12d7   :  { %538 = vst.msk [vmem:[#allocation4] sm:$0x3] %vm537_vm4, %v535_v54  ;;  %654 = vmatmul.msk.f32.vlgmr.msra.gmra.mxu0 %vm54_vm0, %v535_v54  ;;  %vm574_vm0 = vcmask 9216  }
0x12d8   :  { %597 = dma.vmem_to_hbm [thread:$0]  %s593_s13, 32, %s595_s16, [#allocation5]  }
0x12d9   :  { %608 = dma.vmem_to_hbm [thread:$0]  %s604_s17, 32, %s606_s20, [#allocation5]  }
0x1354   :  { %v571_v56 = vpop.f32.mrf.mxu0 }
0x1355   :  { %v572_v57 = vadd.f32 %v663_v55, %v571_v56 }
0x1357   :  { %575 = vst.msk [vmem:[#allocation2] sm:$0x3] %vm574_vm0, %v572_v57 }
0x1358   :  { %586 = dma.vmem_to_hbm [thread:$0]  %s582_s22, 32, %s584_s25, [#allocation3]  }
0x1359   :  { %800 = dma.done.wait [#allocation3], 32  }
0x135a   :  { %801 = vsyncadd [#allocation3], 4294967264 }
0x135b   :  { %802 = dma.done.wait [#allocation5], 64  }
0x135c   :  { %803 = vsyncadd [#allocation5], 4294967232 }
0x135d   :  { %621 = vsyncpa [#allocation3], 1 }
0x135e   :  { %622 = vsyncpa [#allocation5], 1 }

</bundles_post_ra>
